<compile_context>
chip_gen: v6e
topology: v6e:2x2x1
jax: 0.10.0
libtpu: 0.0.40
codegen_flags: <defaults>
</compile_context>

<pallas_src>
import jax
import jax.numpy as jnp
from jax.experimental import pallas as pl
from jax.experimental.pallas import tpu as pltpu


def _round_up(a, b):
    return ((a + b - 1) // b) * b


def _make_tv_kernel(tb, bc):
    """Kernel closure over the (static) block size and true number of planes."""
    needs_mask = (bc % tb) != 0

    def _tv_kernel(x_ref, out_ref):
        # x_ref: (TB, H, W) block of planes; out_ref: SMEM f32[1, 2] partials.
        x = x_ref[...].astype(jnp.float32)

        h_d = x[:, 1:, :] - x[:, :-1, :]          # vertical differences
        w_d = x[:, :, 1:] - x[:, :, :-1]          # horizontal differences

        if needs_mask:
            # Zero out contributions from planes past the real B*C extent
            # (only the last, partial block reaches here).
            start = pl.program_id(0) * tb
            plane = start + jax.lax.broadcasted_iota(jnp.int32, (tb, 1, 1), 0)
            valid = plane < bc
            h_d = jnp.where(valid, h_d, 0.0)
            w_d = jnp.where(valid, w_d, 0.0)

        out_ref[0, 0] = jnp.sum(h_d * h_d)
        out_ref[0, 1] = jnp.sum(w_d * w_d)

    return _tv_kernel


def tv_loss(x, tv_loss_weight=1.0):
    """TV loss matching the PyTorch TVLoss.forward semantics (x is NCHW)."""
    B, C, H, W = x.shape
    bc = B * C
    xf = x.reshape(bc, H, W)

    # Block size: target ~2 MiB of *VMEM-resident* (lane/sublane padded, f32)
    # data per block.  Double-buffered input + in-kernel temporaries stay well
    # under the scoped VMEM limit on all generations (v5e/v6e/v7x).
    plane_vmem_bytes = _round_up(H, 8) * _round_up(W, 128) * 4
    target_block_bytes = 2 * 1024 * 1024
    tb = max(1, min(bc, target_block_bytes // plane_vmem_bytes))
    n_blocks = -(-bc // tb)  # ceil-div

    kernel = _make_tv_kernel(tb, bc)

    partials = pl.pallas_call(
        kernel,
        out_shape=jax.ShapeDtypeStruct((n_blocks, 2), jnp.float32),
        grid_spec=pltpu.PrefetchScalarGridSpec(
            num_scalar_prefetch=0,
            grid=(n_blocks,),
            in_specs=[pl.BlockSpec((tb, H, W), lambda i: (i, 0, 0))],
            out_specs=pl.BlockSpec((1, 2), lambda i: (i, 0),
                                   memory_space=pltpu.SMEM),
        ),
        compiler_params=pltpu.CompilerParams(
            dimension_semantics=("parallel",),
            vmem_limit_bytes=32 * 1024 * 1024,
        ),
    )(xf)

    h_tv = jnp.sum(partials[:, 0])
    w_tv = jnp.sum(partials[:, 1])
    count_h = C * (H - 1) * W     # tensor_size(x[:, :, 1:, :])
    count_w = C * H * (W - 1)     # tensor_size(x[:, :, :, 1:])
    return tv_loss_weight * 2.0 * (h_tv / count_h + w_tv / count_w) / B


def _tv_loss_ref(x, tv_loss_weight=1.0):
    B, C, H, W = x.shape
    xf = x.astype(jnp.float32)
    h_tv = jnp.sum((xf[:, :, 1:, :] - xf[:, :, :-1, :]) ** 2)
    w_tv = jnp.sum((xf[:, :, :, 1:] - xf[:, :, :, :-1]) ** 2)
    count_h = C * (H - 1) * W
    count_w = C * H * (W - 1)
    return tv_loss_weight * 2.0 * (h_tv / count_h + w_tv / count_w) / B


if __name__ == "__main__":
    key = jax.random.PRNGKey(0)
    x = jax.random.normal(key, (2, 4, 16, 16), dtype=jnp.float32)

    out = tv_loss(x, tv_loss_weight=1.0)
    out = jax.block_until_ready(out)

    ref = jax.block_until_ready(_tv_loss_ref(x, 1.0))
    assert jnp.allclose(out, ref, rtol=1e-5, atol=1e-5), (out, ref)

    print("KERNEL_OK")
</pallas_src>

<mosaic_0001>
module attributes {stable_mosaic.version = 11 : i64} {
  func.func @_tv_kernel(%arg0: i32, %arg1: memref<8x16x16xf32, #tpu.memory_space<vmem>>, %arg2: memref<1x2xf32, #tpu.memory_space<smem>>) attributes {dimension_semantics = [#tpu.dimension_semantics<parallel>], iteration_bounds = array<i64: 1>, scalar_prefetch = 0 : i64, scratch_operands = 0 : i64, tpu.core_type = #tpu.core_type<tc>, window_params = [{transform_indices = @transform_0, window_bounds = array<i64: 8, 16, 16>}, {transform_indices = @transform_1, window_bounds = array<i64: 1, 2>}]} {
    %c0 = arith.constant 0 : index
    %c0_0 = arith.constant 0 : index
    %c0_1 = arith.constant 0 : index
    %0 = vector.load %arg1[%c0, %c0_0, %c0_1] : memref<8x16x16xf32, #tpu.memory_space<vmem>>, vector<8x16x16xf32>
    %1 = vector.extract_strided_slice %0 {offsets = [0, 1, 0], sizes = [8, 15, 16], strides = [1, 1, 1]} : vector<8x16x16xf32> to vector<8x15x16xf32>
    %2 = vector.extract_strided_slice %0 {offsets = [0, 0, 0], sizes = [8, 15, 16], strides = [1, 1, 1]} : vector<8x16x16xf32> to vector<8x15x16xf32>
    %3 = arith.subf %1, %2 : vector<8x15x16xf32>
    %4 = vector.extract_strided_slice %0 {offsets = [0, 0, 1], sizes = [8, 16, 15], strides = [1, 1, 1]} : vector<8x16x16xf32> to vector<8x16x15xf32>
    %5 = vector.extract_strided_slice %0 {offsets = [0, 0, 0], sizes = [8, 16, 15], strides = [1, 1, 1]} : vector<8x16x16xf32> to vector<8x16x15xf32>
    %6 = arith.subf %4, %5 : vector<8x16x15xf32>
    %7 = arith.mulf %3, %3 : vector<8x15x16xf32>
    %8 = vector.shape_cast %7 : vector<8x15x16xf32> to vector<1x8x15x16xf32>
    %cst = arith.constant dense<0.000000e+00> : vector<1xf32>
    %9 = vector.multi_reduction <add>, %8, %cst [1, 2, 3] : vector<1x8x15x16xf32> to vector<1xf32>
    %10 = vector.shape_cast %9 : vector<1xf32> to vector<1x1x1x1xf32>
    %11 = vector.extract %10[0, 0, 0, 0] : f32 from vector<1x1x1x1xf32>
    %c0_2 = arith.constant 0 : index
    %c0_3 = arith.constant 0 : index
    %12 = memref.load %arg2[%c0_2, %c0_3] : memref<1x2xf32, #tpu.memory_space<smem>>
    memref.store %11, %arg2[%c0_2, %c0_3] : memref<1x2xf32, #tpu.memory_space<smem>>
    %13 = arith.mulf %6, %6 : vector<8x16x15xf32>
    %14 = vector.shape_cast %13 : vector<8x16x15xf32> to vector<1x8x16x15xf32>
    %cst_4 = arith.constant dense<0.000000e+00> : vector<1xf32>
    %15 = vector.multi_reduction <add>, %14, %cst_4 [1, 2, 3] : vector<1x8x16x15xf32> to vector<1xf32>
    %16 = vector.shape_cast %15 : vector<1xf32> to vector<1x1x1x1xf32>
    %17 = vector.extract %16[0, 0, 0, 0] : f32 from vector<1x1x1x1xf32>
    %c0_5 = arith.constant 0 : index
    %c1 = arith.constant 1 : index
    %18 = memref.load %arg2[%c0_5, %c1] : memref<1x2xf32, #tpu.memory_space<smem>>
    memref.store %17, %arg2[%c0_5, %c1] : memref<1x2xf32, #tpu.memory_space<smem>>
    return
  }
  func.func @transform_0(%arg0: i32) -> (i32, i32, i32) {
    %c0_i32 = arith.constant 0 : i32
    %c0_i32_0 = arith.constant 0 : i32
    %c0_i32_1 = arith.constant 0 : i32
    return %arg0, %c0_i32, %c0_i32_0 : i32, i32, i32
  }
  func.func @transform_1(%arg0: i32) -> (i32, i32) {
    %c0_i32 = arith.constant 0 : i32
    %c0_i32_0 = arith.constant 0 : i32
    return %arg0, %c0_i32 : i32, i32
  }
}

</mosaic_0001>

<bundles_post_ra>
// kernel: tpu_custom_call.1
= control target key start
LH: loop header
LB: loop body
LE: loop exit
PB: predicated region body
PF: predicated region fallthrough
CT: control target
= control target key end

     0   :  { %6 = vsyncpa [#allocation3], 0  ;;  %s654_s0 = inlined_call_operand.hbm [shape: f32[8,16,16], index: 0, kind: input, shape index: {}]   ;;  %s655_s1 = inlined_call_operand.hbm [shape: f32[1,2], index: 1, kind: output, shape index: {}]  }
   0x1   :  { %7 = vsyncpa [#allocation4], 0  ;;  %s472_s6 = smov [#allocation2]  }
   0x2   :  { %s13_s7 = sshll.u32 %s472_s6, 4  ;;  %s14_s7 = int_to_ptr.vmem [resolvable:$true] %s13_s7 }
   0x3   :  { %s448_s8 = scalar_lea.vmem %s14_s7, 2048  ;;  %p453_p1 = scmp.lt.s32.totalorder %s14_s7, %s14_s7 }
   0x4   :  { %p449_p0 = scmp.ne.s32.totalorder %s14_s7, %s448_s8  ;;  %p454_p2 = scmp.lt.s32.totalorder %s448_s8, %s448_s8 }
   0x6   :  { %p455_p3 = por %p454_p2, %p453_p1 }
   0x8   :  { %p456_p4 = pnand %p455_p3, %p449_p0 }
   0xa   :  { %459 = shalt.err (!%p456_p4)
}
   0xb   :  { %s473_s9 = smov 128   ;;  %s474_s10 = smov 8  }
   0xc   :  { %19 = dma.hbm_to_vmem [thread:$0]  %s654_s0, 2048, %s14_s7, [#allocation3], %s473_s9, %s473_s9, %s474_s10  }
   0xd   :  { %468 = dma.done.wait [#allocation3], 2048  }
   0xe   :  { %469 = vsyncadd [#allocation3], 4294965248  ;;  %v491_v0 = vld [vmem:[#allocation2] sm:$0xff]  ;;  %v493_v1 = vld [vmem:[#allocation2 + $0x10] sm:$0xff]  ;;  %s475_s13 = smov 1   ;;  %vm55_vm0 = vcmask 1040384  }
   0xf   :  { %112 = vrot.lane.b32.xlu0 %v491_v0, %s475_s13  ;;  %116 = vrot.lane.b32.xlu1 %v493_v1, %s475_s13  ;;  %v497_v2 = vld [vmem:[#allocation2 + $0x8] sm:$0xff]  ;;  %v499_v3 = vld [vmem:[#allocation2 + $0x18] sm:$0xff]  ;;  %v503_v4 = vld [vmem:[#allocation2 + $0x20] sm:$0xff]  ;;  %v56_v16 = vrot.slane %v491_v0, 7  ;;  %v59_v18 = vrot.slane %v493_v1, 7  ;;  %vm208_vm1 = vcmask 1046528  }
  0x10   :  { %v505_v5 = vld [vmem:[#allocation2 + $0x28] sm:$0xff]  ;;  %v509_v6 = vld [vmem:[#allocation2 + $0x30] sm:$0xff]  ;;  %v511_v7 = vld [vmem:[#allocation2 + $0x38] sm:$0xff]  ;;  %v57_v17 = vrot.slane %v497_v2, 7  ;;  %v60_v20 = vrot.slane %v499_v3, 7  ;;  %v62_v28 = vrot.slane %v503_v4, 7 }
  0x11   :  { %v515_v8 = vld [vmem:[#allocation2 + $0x40] sm:$0xff]  ;;  %v517_v9 = vld [vmem:[#allocation2 + $0x48] sm:$0xff]  ;;  %v521_v10 = vld [vmem:[#allocation2 + $0x50] sm:$0xff]  ;;  %v96_v21 = vsub.f32 %v491_v0, %v56_v16  ;;  %v98_v25 = vsub.f32 %v493_v1, %v59_v18  ;;  %v63_v29 = vrot.slane %v505_v5, 7  ;;  %vm249_vm2 = vcmask 130048   ;;  %s476_s0 = smov 127  }
  0x12   :  { %v523_v11 = vld [vmem:[#allocation2 + $0x58] sm:$0xff]  ;;  %v527_v12 = vld [vmem:[#allocation2 + $0x60] sm:$0xff]  ;;  %v529_v13 = vld [vmem:[#allocation2 + $0x68] sm:$0xff]  ;;  %v58_v19 = vsel %vm55_vm0, %v56_v16, %v57_v17  ;;  %v61_v23 = vsel %vm55_vm0, %v59_v18, %v60_v20  ;;  %vm251_vm3 = vcmask 129024   ;;  %v100_v35 = vsub.f32 %v503_v4, %v62_v28  ;;  %s477_s16 = smov [#allocation5]  }
  0x13   :  { %114 = vrot.lane.b32.xlu0 %v497_v2, %s475_s13  ;;  %118 = vrot.lane.b32.xlu1 %v499_v3, %s475_s13  ;;  %v533_v14 = vld [vmem:[#allocation2 + $0x70] sm:$0xff]  ;;  %v535_v15 = vld [vmem:[#allocation2 + $0x78] sm:$0xff]  ;;  %v97_v22 = vsub.f32 %v497_v2, %v58_v19  ;;  %v176_v24 = vmul.f32 %v96_v21, %v96_v21  ;;  %v99_v27 = vsub.f32 %v499_v3, %v61_v23  ;;  %v65_v40 = vrot.slane %v509_v6, 7 }
  0x14   :  { %v178_v31 = vmul.f32 %v98_v25, %v98_v25  ;;  %v64_v34 = vsel %vm55_vm0, %v62_v28, %v63_v29  ;;  %v66_v41 = vrot.slane %v511_v7, 7  ;;  %v180_v49 = vmul.f32 %v100_v35, %v100_v35 }
  0x15   :  { %v177_v26 = vmul.f32 %v97_v22, %v97_v22  ;;  %v209_v30 = vrot.slane %v176_v24, 1  ;;  %v179_v33 = vmul.f32 %v99_v27, %v99_v27  ;;  %v101_v39 = vsub.f32 %v505_v5, %v64_v34 }
  0x16   :  { %v212_v36 = vrot.slane %v178_v31, 1  ;;  %v67_v51 = vsel %vm55_vm0, %v65_v40, %v66_v41  ;;  %v215_v60 = vrot.slane %v180_v49, 1  ;;  %v102_v62 = vsub.f32 %v509_v6, %v65_v40 }
  0x17   :  { %120 = vrot.lane.b32.xlu0 %v503_v4, %s475_s13  ;;  %122 = vrot.lane.b32.xlu1 %v505_v5, %s475_s13  ;;  %v210_v32 = vrot.slane %v177_v26, 1  ;;  %v213_v38 = vrot.slane %v179_v33, 1  ;;  %v181_v50 = vmul.f32 %v101_v39, %v101_v39  ;;  %v103_v63 = vsub.f32 %v511_v7, %v67_v51 }
  0x18   :  { %v182_v23 = vmul.f32 %v102_v62, %v102_v62  ;;  %vm373_vm4 = vcmask 121856  }
  0x19   :  { %v211_v37 = vsel %vm208_vm1, %v209_v30, %v210_v32  ;;  %v252_v45 = vsel %vm251_vm3, %v210_v32, 0.0  ;;  %v214_v48 = vsel %vm208_vm1, %v212_v36, %v213_v38  ;;  %v216_v61 = vrot.slane %v181_v50, 1 }
  0x1a   :  { %v250_v44 = vsel %vm249_vm2, %v211_v37, 0.0  ;;  %v254_v56 = vsel %vm249_vm2, %v214_v48, 0.0  ;;  %v183_v24 = vmul.f32 %v103_v63, %v103_v63  ;;  %v71_v36 = vrot.slane %v521_v10, 7 }
  0x1b   :  { %124 = vrot.lane.b32.xlu0 %v509_v6, %s475_s13  ;;  %126 = vrot.lane.b32.xlu1 %v511_v7, %s475_s13  ;;  %v253_v53 = vadd.f32 %v252_v45, %v250_v44  ;;  %v217_v22 = vsel %vm208_vm1, %v215_v60, %v216_v61  ;;  %v72_v37 = vrot.slane %v523_v11, 7 }
  0x1c   :  { %v258_v30 = vsel %vm249_vm2, %v217_v22, 0.0  ;;  %v219_v33 = vrot.slane %v183_v24, 1 }
  0x1d   :  { %v255_v17 = vadd.f32 %v254_v56, %v253_v53  ;;  %v106_v56 = vsub.f32 %v521_v10, %v71_v36 }
  0x1f   :  { %128 = vrot.lane.b32.xlu0 %v515_v8, %s475_s13  ;;  %130 = vrot.lane.b32.xlu1 %v517_v9, %s475_s13 }
  0x23   :  { %132 = vrot.lane.b32.xlu0 %v521_v10, %s475_s13  ;;  %134 = vrot.lane.b32.xlu1 %v523_v11, %s475_s13 }
  0x27   :  { %136 = vrot.lane.b32.xlu0 %v527_v12, %s475_s13  ;;  %138 = vrot.lane.b32.xlu1 %v529_v13, %s475_s13 }
  0x2b   :  { %140 = vrot.lane.b32.xlu0 %v533_v14, %s475_s13  ;;  %142 = vrot.lane.b32.xlu1 %v535_v15, %s475_s13 }
  0x81   :  { %v113_v42 = vpop.permute.xlu0 %112  ;;  %v117_v43 = vpop.permute.xlu1 %116 }
  0x82   :  { %v160_v46 = vsub.f32 %v491_v0, %v113_v42  ;;  %v162_v47 = vsub.f32 %v493_v1, %v117_v43  ;;  %v68_v0 = vrot.slane %v515_v8, 7  ;;  %v69_v1 = vrot.slane %v517_v9, 7 }
  0x84   :  { %v293_v52 = vmul.f32 %v160_v46, %v160_v46  ;;  %v295_v57 = vmul.f32 %v162_v47, %v162_v47  ;;  %v70_v25 = vsel %vm55_vm0, %v68_v0, %v69_v1  ;;  %v104_v34 = vsub.f32 %v515_v8, %v68_v0 }
  0x85   :  { %v115_v54 = vpop.permute.xlu0 %114  ;;  %v119_v55 = vpop.permute.xlu1 %118  ;;  %v105_v35 = vsub.f32 %v517_v9, %v70_v25  ;;  %v73_v47 = vsel %vm55_vm0, %v71_v36, %v72_v37  ;;  %v264_v0 = vsel %vm251_vm3, %v219_v33, 0.0 }
  0x86   :  { %v161_v58 = vsub.f32 %v497_v2, %v115_v54  ;;  %325 = vrot.lane.b32.xlu0 %v293_v52, %s476_s0  ;;  %v163_v59 = vsub.f32 %v499_v3, %v119_v55  ;;  %v256_v2 = vsel %vm251_vm3, %v213_v38, 0.0  ;;  %v184_v45 = vmul.f32 %v104_v34, %v104_v34 }
  0x87   :  { %v257_v27 = vadd.f32 %v256_v2, %v255_v17  ;;  %v185_v46 = vmul.f32 %v105_v35, %v105_v35  ;;  %v186_v17 = vmul.f32 %v106_v56, %v106_v56 }
  0x88   :  { %v294_v16 = vmul.f32 %v161_v58, %v161_v58  ;;  %v296_v20 = vmul.f32 %v163_v59, %v163_v59  ;;  %v221_v54 = vrot.slane %v184_v45, 1  ;;  %v74_v58 = vrot.slane %v527_v12, 7 }
  0x89   :  { %v121_v18 = vpop.permute.xlu0 %120  ;;  %v123_v19 = vpop.permute.xlu1 %122  ;;  %v259_v39 = vadd.f32 %v258_v30, %v257_v27  ;;  %v222_v55 = vrot.slane %v185_v46, 1  ;;  %v75_v59 = vrot.slane %v529_v13, 7  ;;  %v77_v30 = vrot.slane %v533_v14, 7 }
  0x8a   :  { %329 = vrot.lane.b32.xlu0 %v295_v57, %s476_s0  ;;  %327 = vrot.lane.b32.xlu1 %v294_v16, %s476_s0  ;;  %v164_v3 = vsub.f32 %v503_v4, %v121_v18  ;;  %v165_v21 = vsub.f32 %v505_v5, %v123_v19  ;;  %v218_v5 = vrot.slane %v182_v23, 1  ;;  %v107_v57 = vsub.f32 %v523_v11, %v73_v47 }
  0x8b   :  { %v76_v19 = vsel %vm55_vm0, %v74_v58, %v75_v59 }
  0x8c   :  { %v297_v26 = vmul.f32 %v164_v3, %v164_v3  ;;  %v298_v31 = vmul.f32 %v165_v21, %v165_v21  ;;  %v220_v44 = vsel %vm208_vm1, %v218_v5, %v219_v33  ;;  %v187_v18 = vmul.f32 %v107_v57, %v107_v57 }
  0x8d   :  { %v125_v28 = vpop.permute.xlu0 %124  ;;  %v127_v29 = vpop.permute.xlu1 %126  ;;  %v262_v52 = vsel %vm249_vm2, %v220_v44, 0.0  ;;  %v268_v5 = vsel %vm251_vm3, %v222_v55, 0.0 }
  0x8e   :  { %331 = vrot.lane.b32.xlu1 %v296_v20, %s476_s0  ;;  %v166_v32 = vsub.f32 %v509_v6, %v125_v28  ;;  %333 = vrot.lane.b32.xlu0 %v297_v26, %s476_s0  ;;  %v167_v4 = vsub.f32 %v511_v7, %v127_v29  ;;  %v260_v6 = vsel %vm251_vm3, %v216_v61, 0.0  ;;  %v224_v26 = vrot.slane %v186_v17, 1 }
  0x8f   :  { %v261_v49 = vadd.f32 %v260_v6, %v259_v39  ;;  %v225_v27 = vrot.slane %v187_v18, 1  ;;  %v108_v28 = vsub.f32 %v527_v12, %v74_v58  ;;  %v109_v29 = vsub.f32 %v529_v13, %v76_v19 }
  0x90   :  { %v299_v38 = vmul.f32 %v166_v32, %v166_v32  ;;  %v300_v42 = vmul.f32 %v167_v4, %v167_v4  ;;  %v110_v39 = vsub.f32 %v533_v14, %v77_v30 }
  0x91   :  { %v129_v40 = vpop.permute.xlu0 %128  ;;  %v131_v41 = vpop.permute.xlu1 %130  ;;  %v263_v61 = vadd.f32 %v262_v52, %v261_v49  ;;  %v226_v34 = vsel %vm208_vm1, %v224_v26, %v225_v27  ;;  %v188_v35 = vmul.f32 %v108_v28, %v108_v28  ;;  %v189_v36 = vmul.f32 %v109_v29, %v109_v29 }
  0x92   :  { %335 = vrot.lane.b32.xlu1 %v298_v31, %s476_s0  ;;  %v168_v7 = vsub.f32 %v515_v8, %v129_v40  ;;  %337 = vrot.lane.b32.xlu0 %v299_v38, %s476_s0  ;;  %v169_v43 = vsub.f32 %v517_v9, %v131_v41  ;;  %v78_v31 = vrot.slane %v535_v15, 7  ;;  %v270_v37 = vsel %vm249_vm2, %v226_v34, 0.0 }
  0x93   :  { %v265_v20 = vadd.f32 %v264_v0, %v263_v61  ;;  %v227_v38 = vrot.slane %v188_v35, 1  ;;  %v228_v41 = vrot.slane %v189_v36, 1 }
  0x94   :  { %v301_v48 = vmul.f32 %v168_v7, %v168_v7  ;;  %v302_v53 = vmul.f32 %v169_v43, %v169_v43  ;;  %v190_v7 = vmul.f32 %v110_v39, %v110_v39 }
  0x95   :  { %v133_v50 = vpop.permute.xlu0 %132  ;;  %v135_v51 = vpop.permute.xlu1 %134  ;;  %v229_v44 = vsel %vm208_vm1, %v227_v38, %v228_v41 }
  0x96   :  { %339 = vrot.lane.b32.xlu1 %v300_v42, %s476_s0  ;;  %v170_v8 = vsub.f32 %v521_v10, %v133_v50  ;;  %341 = vrot.lane.b32.xlu0 %v301_v48, %s476_s0  ;;  %v171_v9 = vsub.f32 %v523_v11, %v135_v51  ;;  %v223_v11 = vsel %vm208_vm1, %v221_v54, %v222_v55  ;;  %v272_v42 = vsel %vm251_vm3, %v225_v27, 0.0 }
  0x97   :  { %v266_v22 = vsel %vm249_vm2, %v223_v11, 0.0  ;;  %v274_v46 = vsel %vm249_vm2, %v229_v44, 0.0  ;;  %v230_v47 = vrot.slane %v190_v7, 1  ;;  %v276_v50 = vsel %vm251_vm3, %v228_v41, 0.0 }
  0x98   :  { %v303_v60 = vmul.f32 %v170_v8, %v170_v8  ;;  %v304_v1 = vmul.f32 %v171_v9, %v171_v9  ;;  %v267_v4 = vadd.f32 %v266_v22, %v265_v20 }
  0x99   :  { %v137_v62 = vpop.permute.xlu0 %136  ;;  %v139_v63 = vpop.permute.xlu1 %138 }
  0x9a   :  { %343 = vrot.lane.b32.xlu1 %v302_v53, %s476_s0  ;;  %v172_v16 = vsub.f32 %v527_v12, %v137_v62  ;;  %345 = vrot.lane.b32.xlu0 %v303_v60, %s476_s0  ;;  %v173_v10 = vsub.f32 %v529_v13, %v139_v63  ;;  %v79_v12 = vsel %vm55_vm0, %v77_v30, %v78_v31 }
  0x9b   :  { %v269_v13 = vadd.f32 %v268_v5, %v267_v4  ;;  %v111_v40 = vsub.f32 %v535_v15, %v79_v12 }
  0x9c   :  { %v305_v2 = vmul.f32 %v172_v16, %v172_v16  ;;  %v306_v23 = vmul.f32 %v173_v10, %v173_v10 }
  0x9d   :  { %v141_v3 = vpop.permute.xlu0 %140  ;;  %v143_v21 = vpop.permute.xlu1 %142  ;;  %v271_v6 = vadd.f32 %v270_v37, %v269_v13  ;;  %v191_v43 = vmul.f32 %v111_v40, %v111_v40 }
  0x9e   :  { %347 = vrot.lane.b32.xlu1 %v304_v1, %s476_s0  ;;  %v174_v24 = vsub.f32 %v533_v14, %v141_v3  ;;  %349 = vrot.lane.b32.xlu0 %v305_v2, %s476_s0  ;;  %v175_v25 = vsub.f32 %v535_v15, %v143_v21 }
  0x9f   :  { %v273_v45 = vadd.f32 %v272_v42, %v271_v6  ;;  %v231_v48 = vrot.slane %v191_v43, 1 }
  0xa0   :  { %v307_v32 = vmul.f32 %v174_v24, %v174_v24  ;;  %v308_v33 = vmul.f32 %v175_v25, %v175_v25 }
  0xa1   :  { %v275_v49 = vadd.f32 %v274_v46, %v273_v45  ;;  %v232_v14 = vsel %vm208_vm1, %v230_v47, %v231_v48  ;;  %v280_v53 = vsel %vm251_vm3, %v231_v48, 0.0 }
  0xa2   :  { %351 = vrot.lane.b32.xlu1 %v306_v23, %s476_s0  ;;  %353 = vrot.lane.b32.xlu0 %v307_v32, %s476_s0  ;;  %v278_v15 = vsel %vm249_vm2, %v232_v14, 0.0 }
  0xa3   :  { %v277_v51 = vadd.f32 %v276_v50, %v275_v49 }
  0xa5   :  { %v279_v52 = vadd.f32 %v278_v15, %v277_v51 }
  0xa6   :  { %355 = vrot.lane.b32.xlu1 %v308_v33, %s476_s0 }
  0xa7   :  { %v281_v8 = vadd.f32 %v280_v53, %v279_v52 }
  0xc1   :  { %282 = vadd.xlane.f32.xlu0 %v281_v8 }
  0xf8   :  { %v326_v9 = vpop.permute.xlu0 %325 }
  0xf9   :  { %v374_v56 = vsel %vm373_vm4, %v326_v9, 0.0 }
  0xfc   :  { %v328_v54 = vpop.permute.xlu1 %327  ;;  %v330_v55 = vpop.permute.xlu0 %329 }
  0xfd   :  { %v375_v57 = vsel %vm373_vm4, %v328_v54, 0.0  ;;  %v377_v59 = vsel %vm373_vm4, %v330_v55, 0.0 }
  0xfe   :  { %v376_v58 = vadd.f32 %v375_v57, %v374_v56 }
 0x100   :  { %v378_v60 = vadd.f32 %v377_v59, %v376_v58  ;;  %v332_v61 = vpop.permute.xlu1 %331  ;;  %v334_v62 = vpop.permute.xlu0 %333 }
 0x101   :  { %v379_v63 = vsel %vm373_vm4, %v332_v61, 0.0  ;;  %v381_v0 = vsel %vm373_vm4, %v334_v62, 0.0 }
 0x102   :  { %v380_v1 = vadd.f32 %v379_v63, %v378_v60 }
 0x104   :  { %v382_v16 = vadd.f32 %v381_v0, %v380_v1  ;;  %v336_v10 = vpop.permute.xlu1 %335  ;;  %v338_v11 = vpop.permute.xlu0 %337 }
 0x105   :  { %v383_v17 = vsel %vm373_vm4, %v336_v10, 0.0  ;;  %v385_v18 = vsel %vm373_vm4, %v338_v11, 0.0 }
 0x106   :  { %v384_v19 = vadd.f32 %v383_v17, %v382_v16 }
 0x108   :  { %v386_v2 = vadd.f32 %v385_v18, %v384_v19  ;;  %v340_v20 = vpop.permute.xlu1 %339  ;;  %v342_v3 = vpop.permute.xlu0 %341 }
 0x109   :  { %v387_v21 = vsel %vm373_vm4, %v340_v20, 0.0  ;;  %v389_v22 = vsel %vm373_vm4, %v342_v3, 0.0 }
 0x10a   :  { %v388_v23 = vadd.f32 %v387_v21, %v386_v2 }
 0x10c   :  { %v390_v24 = vadd.f32 %v389_v22, %v388_v23  ;;  %v344_v25 = vpop.permute.xlu1 %343  ;;  %v346_v26 = vpop.permute.xlu0 %345 }
 0x10d   :  { %v391_v27 = vsel %vm373_vm4, %v344_v25, 0.0  ;;  %v393_v28 = vsel %vm373_vm4, %v346_v26, 0.0 }
 0x10e   :  { %v392_v29 = vadd.f32 %v391_v27, %v390_v24 }
 0x110   :  { %v394_v30 = vadd.f32 %v393_v28, %v392_v29  ;;  %v348_v31 = vpop.permute.xlu1 %347  ;;  %v350_v32 = vpop.permute.xlu0 %349 }
 0x111   :  { %v395_v4 = vsel %vm373_vm4, %v348_v31, 0.0  ;;  %v397_v5 = vsel %vm373_vm4, %v350_v32, 0.0 }
 0x112   :  { %v396_v33 = vadd.f32 %v395_v4, %v394_v30 }
 0x114   :  { %v398_v34 = vadd.f32 %v397_v5, %v396_v33  ;;  %v352_v35 = vpop.permute.xlu1 %351  ;;  %v354_v36 = vpop.permute.xlu0 %353 }
 0x115   :  { %v399_v12 = vsel %vm373_vm4, %v352_v35, 0.0  ;;  %v401_v13 = vsel %vm373_vm4, %v354_v36, 0.0 }
 0x116   :  { %v400_v37 = vadd.f32 %v399_v12, %v398_v34 }
 0x118   :  { %v402_v38 = vadd.f32 %v401_v13, %v400_v37  ;;  %v356_v39 = vpop.permute.xlu1 %355 }
 0x119   :  { %v403_v40 = vsel %vm373_vm4, %v356_v39, 0.0 }
 0x11a   :  { %v404_v41 = vadd.f32 %v403_v40, %v402_v38 }
 0x11c   :  { %405 = vadd.xlane.f32.xlu1 %v404_v41 }
 0x14a   :  { %v283_v6 = vpop.xlane.xlu0 %282 }
 0x14b   :  { %v284_v42 = vrot.slane %v283_v6, 4 }
 0x14d   :  { %v285_v7 = vadd.f32 %v284_v42, %v283_v6 }
 0x14f   :  { %v286_v43 = vrot.slane %v285_v7, 2 }
 0x151   :  { %v287_v44 = vadd.f32 %v286_v43, %v285_v7 }
 0x153   :  { %v288_v45 = vrot.slane %v287_v44, 1 }
 0x155   :  { %v289_v46 = vadd.f32 %v288_v45, %v287_v44 }
 0x157   :  { %430 = vpush %v289_v46 }
 0x188   :  { %s431_s14 = spop %430 }
 0x189   :  { %292 = sst [smem:[#allocation5]] %s431_s14 }
 0x1a5   :  { %v406_v47 = vpop.xlane.xlu1 %405 }
 0x1a6   :  { %v407_v48 = vrot.slane %v406_v47, 4 }
 0x1a8   :  { %v408_v49 = vadd.f32 %v407_v48, %v406_v47 }
 0x1aa   :  { %v409_v50 = vrot.slane %v408_v49, 2 }
 0x1ac   :  { %v410_v14 = vadd.f32 %v409_v50, %v408_v49 }
 0x1ae   :  { %v411_v51 = vrot.slane %v410_v14, 1 }
 0x1b0   :  { %v412_v15 = vadd.f32 %v411_v51, %v410_v14 }
 0x1b2   :  { %432 = vpush %v412_v15 }
 0x1e3   :  { %s433_s15 = spop %432 }
 0x1e4   :  { %415 = sst [smem:[#allocation5 + $0x1]] %s433_s15 }
 0x1e5   :  { %423 = dma.smem_to_hbm %s477_s16, 16, %s655_s1, [#allocation4]  }
 0x1e6   :  { %470 = dma.done.wait [#allocation4], 16  }
 0x1e7   :  { %471 = vsyncadd [#allocation4], 4294967280 }
 0x1e8   :  { %427 = sfence }
 0x1e9   :  { %428 = vsyncpa [#allocation3], 1 }
 0x1ea   :  { %429 = vsyncpa [#allocation4], 1 }

</bundles_post_ra>
